<compile_context>
chip_gen: v5e
topology: v5e:2x2
jax: 0.10.0
libtpu: 0.0.40
codegen_flags: <defaults>
</compile_context>

<pallas_src>
import functools

import jax
import jax.numpy as jnp
from jax import lax
from jax.experimental import pallas as pl
from jax.experimental.pallas import tpu as pltpu

LANE = 128  # lane width used to pad the tiny num_classes output dimension


def _round_up(x, m):
    return ((x + m - 1) // m) * m


def fcn_kernel(x1_ref, w1_ref, b1_ref, w2_ref, b2_ref, w3_ref, b3_ref, out_ref, *, t3):
    """One batch block.

    x1_ref : (BB, L_pad, 3*C_in) bf16  layer-1 im2col input (taps on lanes)
    w1_ref : (3*C_in, 64)        bf16
    w2_ref : (3, 64, 128)        bf16  per-tap layer-2 weights
    w3_ref : (3*128, nc_pad)     bf16  tap-major flattened layer-3 weights
    b*_ref : (1, C)              f32
    out_ref: (BB, nc_pad)        f32   pooled logits (sublane/lane dense)
    t3     : static int = L - 6 (valid conv3 positions, the avg-pool window)
    """
    bb, l_pad, k3c = x1_ref.shape
    m = bb * l_pad

    # ---- Layer 1: single im2col matmul (im2col done once in the wrapper) ----
    x1 = x1_ref[...].reshape(m, k3c)                                    # layout-preserving
    h1 = jnp.dot(x1, w1_ref[...], preferred_element_type=jnp.float32)   # (M, 64) f32
    h1 = jnp.maximum(h1 + b1_ref[...], 0.0)                             # bias + ReLU in f32

    # ---- Layer 2: accumulate 3 tap matmuls; shifted views via sublane roll ----
    w2 = w2_ref[...]                                                    # (3, 64, 128) bf16
    acc2 = jnp.dot(h1.astype(jnp.bfloat16), w2[0],
                   preferred_element_type=jnp.float32)
    for k in (1, 2):
        # pltpu.roll == jnp.roll; shift M-k brings row t+k to row t. The wrapped
        # tail rows only land in garbage time positions that never feed the output.
        h1_k = pltpu.roll(h1, m - k, 0).astype(jnp.bfloat16)
        acc2 = acc2 + jnp.dot(h1_k, w2[k], preferred_element_type=jnp.float32)
    h2 = jnp.maximum(acc2 + b2_ref[...], 0.0)                           # (M, 128) f32

    # ---- Layer 3 fused with AdaptiveAvgPool1d(1) ----
    # mean_t conv3(h2) = sum_k (mean_{t in [k, k+t3)} h2[t]) @ w3[k] + b3
    h2_3d = h2.reshape(bb, l_pad, h2.shape[-1])                         # layout-preserving
    t_idx = lax.broadcasted_iota(jnp.int32, (1, l_pad, 1), 1)
    inv_t3 = 1.0 / t3
    taps = []
    for k in range(3):
        mask = jnp.logical_and(t_idx >= k, t_idx < k + t3)
        m_k = jnp.sum(jnp.where(mask, h2_3d, 0.0), axis=1) * inv_t3     # (BB, 128) f32
        taps.append(m_k.astype(jnp.bfloat16))
    pooled = jnp.concatenate(taps, axis=-1)                             # (BB, 384), 128-aligned
    out = jnp.dot(pooled, w3_ref[...], preferred_element_type=jnp.float32) + b3_ref[...]
    out_ref[...] = out.astype(out_ref.dtype)                            # (BB, nc_pad)


def _choose_block_b(B, requested):
    if requested is not None:
        return max(8, _round_up(requested, 8))
    b8 = _round_up(B, 8)
    if b8 <= 16:
        return b8
    # >= 2 grid steps so the "parallel" batch axis can shard across v7x's two
    # TensorCores; cap at 512 so live VMEM stays well inside v7x's 64 MiB.
    half = _round_up(_round_up(B, 16) // 2, 8)
    return min(512, half)


def fcn_forward(x_ncl, params, *, block_b=None):
    """x_ncl: (B, C_in, L) like the PyTorch module. Returns (B, num_classes)."""
    w1, b1, w2, b2, w3, b3 = params
    B, C_in, L = x_ncl.shape
    assert L >= 7, "need at least 7 time steps for three valid k=3 convs"
    c1 = w1.shape[2]            # 64
    c2 = w2.shape[2]            # 128
    num_classes = w3.shape[2]
    nc_pad = _round_up(num_classes, LANE)

    # Time padded to a multiple of 16 so bf16/f32 batch*time reshapes stay
    # layout-preserving; padded tail positions are excluded from the mean.
    l_pad = _round_up(L, 16)
    t3 = L - 6                  # valid conv3 output length (avg-pool window)

    block_b = _choose_block_b(B, block_b)
    b_pad = _round_up(B, block_b)

    # ---- wrapper-side glue (runs once as tiny XLA ops) ----
    x_blc = jnp.transpose(x_ncl, (0, 2, 1))                              # NCL -> (B, L, C)
    x_blc = jnp.pad(x_blc, ((0, b_pad - B), (0, l_pad - L), (0, 0)))
    # Layer-1 im2col: tap k contributes channels [k*C_in:(k+1)*C_in].
    taps = [jnp.pad(x_blc[:, k:, :], ((0, 0), (0, k), (0, 0))) for k in range(3)]
    x1 = jnp.concatenate(taps, axis=-1).astype(jnp.bfloat16)             # (b_pad, l_pad, 3*C_in)

    w1f = w1.reshape(3 * C_in, c1).astype(jnp.bfloat16)
    w2s = w2.astype(jnp.bfloat16)                                         # (3, 64, 128)
    w3p = jnp.pad(w3, ((0, 0), (0, 0), (0, nc_pad - num_classes)))
    w3f = w3p.reshape(3 * c2, nc_pad).astype(jnp.bfloat16)
    b1f = b1.astype(jnp.float32)
    b2f = b2.astype(jnp.float32)
    b3f = jnp.pad(b3, ((0, 0), (0, nc_pad - num_classes))).astype(jnp.float32)

    full = lambda a: pl.BlockSpec(a.shape, lambda i: (0,) * a.ndim)

    out = pl.pallas_call(
        functools.partial(fcn_kernel, t3=t3),
        out_shape=jax.ShapeDtypeStruct((b_pad, nc_pad), jnp.float32),
        grid_spec=pltpu.PrefetchScalarGridSpec(
            num_scalar_prefetch=0,
            grid=(b_pad // block_b,),
            in_specs=[
                pl.BlockSpec((block_b, l_pad, 3 * C_in), lambda i: (i, 0, 0)),
                full(w1f), full(b1f),
                full(w2s), full(b2f),
                full(w3f), full(b3f),
            ],
            out_specs=pl.BlockSpec((block_b, nc_pad), lambda i: (i, 0)),
        ),
        compiler_params=pltpu.CompilerParams(
            dimension_semantics=("parallel",),
            # ~15-20 MB live at block_b=512; 48 MiB leaves headroom yet stays
            # inside v7x's 64 MiB physical VMEM (128 MiB on v5e/v6e).
            vmem_limit_bytes=48 * 1024 * 1024,
        ),
    )(x1, w1f, b1f, w2s, b2f, w3f, b3f)

    return out[:B, :num_classes]


def init_params(key, c_in, num_classes):
    """Deterministic synthetic init (layout (K, Cin, Cout), matching nn.Conv1d fan-in)."""
    ks = jax.random.split(key, 6)

    def conv_init(kw, kb, cin, cout):
        bound = 1.0 / jnp.sqrt(cin * 3.0)
        w = jax.random.uniform(kw, (3, cin, cout), jnp.float32, -bound, bound)
        b = jax.random.uniform(kb, (1, cout), jnp.float32, -bound, bound)
        return w, b

    w1, b1 = conv_init(ks[0], ks[1], c_in, 64)
    w2, b2 = conv_init(ks[2], ks[3], 64, 128)
    w3, b3 = conv_init(ks[4], ks[5], 128, num_classes)
    return w1, b1, w2, b2, w3, b3


def fcn_reference(x_ncl, params):
    """Pure-JAX f32 reference using lax conv (matches PyTorch Conv1d semantics)."""
    w1, b1, w2, b2, w3, b3 = params

    def conv(x, w, b):
        # x: (B, C, L); lax wants weights (Cout, Cin, K); ours are (K, Cin, Cout).
        w_oik = jnp.transpose(w, (2, 1, 0))
        y = lax.conv_general_dilated(
            x, w_oik, window_strides=(1,), padding="VALID",
            dimension_numbers=("NCH", "OIH", "NCH"))
        return y + b.reshape(1, -1, 1)

    h = jax.nn.relu(conv(x_ncl, w1, b1))
    h = jax.nn.relu(conv(h, w2, b2))
    h = conv(h, w3, b3)
    return jnp.mean(h, axis=-1)  # AdaptiveAvgPool1d(1) + flatten


if __name__ == "__main__":
    key = jax.random.PRNGKey(0)
    k_x, k_p, k_x2 = jax.random.split(key, 3)

    B, C_in, L = 2, 4, 16          # config['Data_shape'] = (B, C_in, L)
    num_classes = 3

    params = init_params(k_p, C_in, num_classes)

    # Small shape matching the module config.
    x = jax.random.normal(k_x, (B, C_in, L), jnp.float32)
    out = jax.block_until_ready(fcn_forward(x, params))
    ref = fcn_reference(x, params)
    assert out.shape == (B, num_classes)
    # bf16 MXU operands -> slightly relaxed tolerance vs the f32 reference.
    assert jnp.allclose(out, ref, atol=3e-2, rtol=3e-2), (out, ref)

    # Larger batch exercises the multi-step "parallel" grid and batch padding.
    B2 = 40
    x2 = jax.random.normal(k_x2, (B2, C_in, L), jnp.float32)
    out2 = jax.block_until_ready(fcn_forward(x2, params))
    ref2 = fcn_reference(x2, params)
    assert out2.shape == (B2, num_classes)
    assert jnp.allclose(out2, ref2, atol=3e-2, rtol=3e-2)

    print("KERNEL_OK")
</pallas_src>

<mosaic_0001>
module attributes {stable_mosaic.version = 11 : i64} {
  func.func @fcn_kernel(%arg0: i32, %arg1: memref<8x16x12xbf16, #tpu.memory_space<vmem>>, %arg2: memref<12x64xbf16, #tpu.memory_space<vmem>>, %arg3: memref<1x64xf32, #tpu.memory_space<vmem>>, %arg4: memref<3x64x128xbf16, #tpu.memory_space<vmem>>, %arg5: memref<1x128xf32, #tpu.memory_space<vmem>>, %arg6: memref<384x128xbf16, #tpu.memory_space<vmem>>, %arg7: memref<1x128xf32, #tpu.memory_space<vmem>>, %arg8: memref<8x128xf32, #tpu.memory_space<vmem>>) attributes {dimension_semantics = [#tpu.dimension_semantics<parallel>], iteration_bounds = array<i64: 1>, scalar_prefetch = 0 : i64, scratch_operands = 0 : i64, tpu.core_type = #tpu.core_type<tc>, window_params = [{transform_indices = @transform_0, window_bounds = array<i64: 8, 16, 12>}, {pipeline_mode = #tpu.pipeline_mode<synchronous>, transform_indices = @transform_1, window_bounds = array<i64: 12, 64>}, {pipeline_mode = #tpu.pipeline_mode<synchronous>, transform_indices = @transform_2, window_bounds = array<i64: 1, 64>}, {pipeline_mode = #tpu.pipeline_mode<synchronous>, transform_indices = @transform_3, window_bounds = array<i64: 3, 64, 128>}, {pipeline_mode = #tpu.pipeline_mode<synchronous>, transform_indices = @transform_4, window_bounds = array<i64: 1, 128>}, {pipeline_mode = #tpu.pipeline_mode<synchronous>, transform_indices = @transform_5, window_bounds = array<i64: 384, 128>}, {pipeline_mode = #tpu.pipeline_mode<synchronous>, transform_indices = @transform_6, window_bounds = array<i64: 1, 128>}, {transform_indices = @transform_7, window_bounds = array<i64: 8, 128>}]} {
    %c0 = arith.constant 0 : index
    %c0_0 = arith.constant 0 : index
    %c0_1 = arith.constant 0 : index
    %0 = vector.load %arg1[%c0, %c0_0, %c0_1] : memref<8x16x12xbf16, #tpu.memory_space<vmem>>, vector<8x16x12xbf16>
    %1 = vector.shape_cast %0 : vector<8x16x12xbf16> to vector<128x12xbf16>
    %c0_2 = arith.constant 0 : index
    %c0_3 = arith.constant 0 : index
    %2 = vector.load %arg2[%c0_2, %c0_3] : memref<12x64xbf16, #tpu.memory_space<vmem>>, vector<12x64xbf16>
    %cst = arith.constant dense<0.000000e+00> : vector<128x64xf32>
    %3 = tpu.matmul %1, %2, %cst {dimension_numbers = #tpu.dot_dimension_numbers<[1], [0], [0], [1], [0, 0, 1, 1], [], []>} : vector<128x12xbf16>, vector<12x64xbf16>, vector<128x64xf32> -> vector<128x64xf32>
    %c0_4 = arith.constant 0 : index
    %c0_5 = arith.constant 0 : index
    %4 = vector.load %arg3[%c0_4, %c0_5] : memref<1x64xf32, #tpu.memory_space<vmem>>, vector<1x64xf32>
    %5 = vector.broadcast %4 : vector<1x64xf32> to vector<128x64xf32>
    %6 = arith.addf %3, %5 : vector<128x64xf32>
    %cst_6 = arith.constant 0.000000e+00 : f32
    %7 = vector.broadcast %cst_6 : f32 to vector<128x64xf32>
    %8 = arith.maximumf %6, %7 : vector<128x64xf32>
    %c0_7 = arith.constant 0 : index
    %c0_8 = arith.constant 0 : index
    %c0_9 = arith.constant 0 : index
    %9 = vector.load %arg4[%c0_7, %c0_8, %c0_9] : memref<3x64x128xbf16, #tpu.memory_space<vmem>>, vector<3x64x128xbf16>
    %10 = arith.truncf %8 : vector<128x64xf32> to vector<128x64xbf16>
    %11 = vector.extract_strided_slice %9 {offsets = [0, 0, 0], sizes = [1, 64, 128], strides = [1, 1, 1]} : vector<3x64x128xbf16> to vector<1x64x128xbf16>
    %12 = vector.shape_cast %11 : vector<1x64x128xbf16> to vector<64x128xbf16>
    %cst_10 = arith.constant dense<0.000000e+00> : vector<128x128xf32>
    %13 = tpu.matmul %10, %12, %cst_10 {dimension_numbers = #tpu.dot_dimension_numbers<[1], [0], [0], [1], [0, 0, 1, 1], [], []>} : vector<128x64xbf16>, vector<64x128xbf16>, vector<128x128xf32> -> vector<128x128xf32>
    %c127_i32 = arith.constant 127 : i32
    %14 = tpu.dynamic_rotate %8 by %c127_i32 dim 0 : vector<128x64xf32>, i32 -> vector<128x64xf32>
    %15 = arith.truncf %14 : vector<128x64xf32> to vector<128x64xbf16>
    %16 = vector.extract_strided_slice %9 {offsets = [1, 0, 0], sizes = [1, 64, 128], strides = [1, 1, 1]} : vector<3x64x128xbf16> to vector<1x64x128xbf16>
    %17 = vector.shape_cast %16 : vector<1x64x128xbf16> to vector<64x128xbf16>
    %cst_11 = arith.constant dense<0.000000e+00> : vector<128x128xf32>
    %18 = tpu.matmul %15, %17, %cst_11 {dimension_numbers = #tpu.dot_dimension_numbers<[1], [0], [0], [1], [0, 0, 1, 1], [], []>} : vector<128x64xbf16>, vector<64x128xbf16>, vector<128x128xf32> -> vector<128x128xf32>
    %19 = arith.addf %13, %18 : vector<128x128xf32>
    %c126_i32 = arith.constant 126 : i32
    %20 = tpu.dynamic_rotate %8 by %c126_i32 dim 0 : vector<128x64xf32>, i32 -> vector<128x64xf32>
    %21 = arith.truncf %20 : vector<128x64xf32> to vector<128x64xbf16>
    %22 = vector.extract_strided_slice %9 {offsets = [2, 0, 0], sizes = [1, 64, 128], strides = [1, 1, 1]} : vector<3x64x128xbf16> to vector<1x64x128xbf16>
    %23 = vector.shape_cast %22 : vector<1x64x128xbf16> to vector<64x128xbf16>
    %cst_12 = arith.constant dense<0.000000e+00> : vector<128x128xf32>
    %24 = tpu.matmul %21, %23, %cst_12 {dimension_numbers = #tpu.dot_dimension_numbers<[1], [0], [0], [1], [0, 0, 1, 1], [], []>} : vector<128x64xbf16>, vector<64x128xbf16>, vector<128x128xf32> -> vector<128x128xf32>
    %25 = arith.addf %19, %24 : vector<128x128xf32>
    %c0_13 = arith.constant 0 : index
    %c0_14 = arith.constant 0 : index
    %26 = vector.load %arg5[%c0_13, %c0_14] : memref<1x128xf32, #tpu.memory_space<vmem>>, vector<1x128xf32>
    %27 = vector.broadcast %26 : vector<1x128xf32> to vector<128x128xf32>
    %28 = arith.addf %25, %27 : vector<128x128xf32>
    %cst_15 = arith.constant 0.000000e+00 : f32
    %29 = vector.broadcast %cst_15 : f32 to vector<128x128xf32>
    %30 = arith.maximumf %28, %29 : vector<128x128xf32>
    %31 = vector.shape_cast %30 : vector<128x128xf32> to vector<8x16x128xf32>
    %32 = tpu.iota {dimensions = array<i32: 1>} : vector<1x16x1xi32>
    %c0_i32 = arith.constant 0 : i32
    %33 = vector.broadcast %c0_i32 : i32 to vector<1x16x1xi32>
    %34 = arith.cmpi sge, %32, %33 : vector<1x16x1xi32>
    %c10_i32 = arith.constant 10 : i32
    %35 = vector.broadcast %c10_i32 : i32 to vector<1x16x1xi32>
    %36 = arith.cmpi slt, %32, %35 : vector<1x16x1xi32>
    %37 = arith.andi %34, %36 : vector<1x16x1xi1>
    %cst_16 = arith.constant 0.000000e+00 : f32
    %38 = vector.shape_cast %37 : vector<1x16x1xi1> to vector<1x16x1xi1>
    %39 = vector.broadcast %38 : vector<1x16x1xi1> to vector<8x16x128xi1>
    %40 = vector.broadcast %cst_16 : f32 to vector<8x16x128xf32>
    %41 = arith.select %39, %31, %40 : vector<8x16x128xi1>, vector<8x16x128xf32>
    %cst_17 = arith.constant dense<0.000000e+00> : vector<8x128xf32>
    %42 = vector.multi_reduction <add>, %41, %cst_17 [1] : vector<8x16x128xf32> to vector<8x128xf32>
    %cst_18 = arith.constant 1.000000e-01 : f32
    %43 = vector.broadcast %cst_18 : f32 to vector<8x128xf32>
    %44 = arith.mulf %42, %43 : vector<8x128xf32>
    %45 = arith.truncf %44 : vector<8x128xf32> to vector<8x128xbf16>
    %c1_i32 = arith.constant 1 : i32
    %46 = vector.broadcast %c1_i32 : i32 to vector<1x16x1xi32>
    %47 = arith.cmpi sge, %32, %46 : vector<1x16x1xi32>
    %c11_i32 = arith.constant 11 : i32
    %48 = vector.broadcast %c11_i32 : i32 to vector<1x16x1xi32>
    %49 = arith.cmpi slt, %32, %48 : vector<1x16x1xi32>
    %50 = arith.andi %47, %49 : vector<1x16x1xi1>
    %cst_19 = arith.constant 0.000000e+00 : f32
    %51 = vector.shape_cast %50 : vector<1x16x1xi1> to vector<1x16x1xi1>
    %52 = vector.broadcast %51 : vector<1x16x1xi1> to vector<8x16x128xi1>
    %53 = vector.broadcast %cst_19 : f32 to vector<8x16x128xf32>
    %54 = arith.select %52, %31, %53 : vector<8x16x128xi1>, vector<8x16x128xf32>
    %cst_20 = arith.constant dense<0.000000e+00> : vector<8x128xf32>
    %55 = vector.multi_reduction <add>, %54, %cst_20 [1] : vector<8x16x128xf32> to vector<8x128xf32>
    %cst_21 = arith.constant 1.000000e-01 : f32
    %56 = vector.broadcast %cst_21 : f32 to vector<8x128xf32>
    %57 = arith.mulf %55, %56 : vector<8x128xf32>
    %58 = arith.truncf %57 : vector<8x128xf32> to vector<8x128xbf16>
    %c2_i32 = arith.constant 2 : i32
    %59 = vector.broadcast %c2_i32 : i32 to vector<1x16x1xi32>
    %60 = arith.cmpi sge, %32, %59 : vector<1x16x1xi32>
    %c12_i32 = arith.constant 12 : i32
    %61 = vector.broadcast %c12_i32 : i32 to vector<1x16x1xi32>
    %62 = arith.cmpi slt, %32, %61 : vector<1x16x1xi32>
    %63 = arith.andi %60, %62 : vector<1x16x1xi1>
    %cst_22 = arith.constant 0.000000e+00 : f32
    %64 = vector.shape_cast %63 : vector<1x16x1xi1> to vector<1x16x1xi1>
    %65 = vector.broadcast %64 : vector<1x16x1xi1> to vector<8x16x128xi1>
    %66 = vector.broadcast %cst_22 : f32 to vector<8x16x128xf32>
    %67 = arith.select %65, %31, %66 : vector<8x16x128xi1>, vector<8x16x128xf32>
    %cst_23 = arith.constant dense<0.000000e+00> : vector<8x128xf32>
    %68 = vector.multi_reduction <add>, %67, %cst_23 [1] : vector<8x16x128xf32> to vector<8x128xf32>
    %cst_24 = arith.constant 1.000000e-01 : f32
    %69 = vector.broadcast %cst_24 : f32 to vector<8x128xf32>
    %70 = arith.mulf %68, %69 : vector<8x128xf32>
    %71 = arith.truncf %70 : vector<8x128xf32> to vector<8x128xbf16>
    %72 = tpu.concatenate %45, %58, %71 in 1 : vector<8x128xbf16>, vector<8x128xbf16>, vector<8x128xbf16> -> vector<8x384xbf16>
    %c0_25 = arith.constant 0 : index
    %c0_26 = arith.constant 0 : index
    %73 = vector.load %arg6[%c0_25, %c0_26] : memref<384x128xbf16, #tpu.memory_space<vmem>>, vector<384x128xbf16>
    %cst_27 = arith.constant dense<0.000000e+00> : vector<8x128xf32>
    %74 = tpu.matmul %72, %73, %cst_27 {dimension_numbers = #tpu.dot_dimension_numbers<[1], [0], [0], [1], [0, 0, 1, 1], [], []>} : vector<8x384xbf16>, vector<384x128xbf16>, vector<8x128xf32> -> vector<8x128xf32>
    %c0_28 = arith.constant 0 : index
    %c0_29 = arith.constant 0 : index
    %75 = vector.load %arg7[%c0_28, %c0_29] : memref<1x128xf32, #tpu.memory_space<vmem>>, vector<1x128xf32>
    %76 = vector.broadcast %75 : vector<1x128xf32> to vector<8x128xf32>
    %77 = arith.addf %74, %76 : vector<8x128xf32>
    %c0_30 = arith.constant 0 : index
    %c0_31 = arith.constant 0 : index
    %78 = vector.load %arg8[%c0_30, %c0_31] : memref<8x128xf32, #tpu.memory_space<vmem>>, vector<8x128xf32>
    tpu.vector_store %arg8[%c0_30, %c0_31], %77 {strides = array<i32>} : memref<8x128xf32, #tpu.memory_space<vmem>>, vector<8x128xf32>,
    return
  }
  func.func @transform_0(%arg0: i32) -> (i32, i32, i32) {
    %c0_i32 = arith.constant 0 : i32
    %c0_i32_0 = arith.constant 0 : i32
    %c0_i32_1 = arith.constant 0 : i32
    return %arg0, %c0_i32, %c0_i32_0 : i32, i32, i32
  }
  func.func @transform_1(%arg0: i32) -> (i32, i32) {
    %c0_i32 = arith.constant 0 : i32
    %c0_i32_0 = arith.constant 0 : i32
    %c0_i32_1 = arith.constant 0 : i32
    return %c0_i32, %c0_i32_0 : i32, i32
  }
  func.func @transform_2(%arg0: i32) -> (i32, i32) {
    %c0_i32 = arith.constant 0 : i32
    %c0_i32_0 = arith.constant 0 : i32
    %c0_i32_1 = arith.constant 0 : i32
    return %c0_i32, %c0_i32_0 : i32, i32
  }
  func.func @transform_3(%arg0: i32) -> (i32, i32, i32) {
    %c0_i32 = arith.constant 0 : i32
    %c0_i32_0 = arith.constant 0 : i32
    %c0_i32_1 = arith.constant 0 : i32
    %c0_i32_2 = arith.constant 0 : i32
    return %c0_i32, %c0_i32_0, %c0_i32_1 : i32, i32, i32
  }
  func.func @transform_4(%arg0: i32) -> (i32, i32) {
    %c0_i32 = arith.constant 0 : i32
    %c0_i32_0 = arith.constant 0 : i32
    %c0_i32_1 = arith.constant 0 : i32
    return %c0_i32, %c0_i32_0 : i32, i32
  }
  func.func @transform_5(%arg0: i32) -> (i32, i32) {
    %c0_i32 = arith.constant 0 : i32
    %c0_i32_0 = arith.constant 0 : i32
    %c0_i32_1 = arith.constant 0 : i32
    return %c0_i32, %c0_i32_0 : i32, i32
  }
  func.func @transform_6(%arg0: i32) -> (i32, i32) {
    %c0_i32 = arith.constant 0 : i32
    %c0_i32_0 = arith.constant 0 : i32
    %c0_i32_1 = arith.constant 0 : i32
    return %c0_i32, %c0_i32_0 : i32, i32
  }
  func.func @transform_7(%arg0: i32) -> (i32, i32) {
    %c0_i32 = arith.constant 0 : i32
    %c0_i32_0 = arith.constant 0 : i32
    return %arg0, %c0_i32 : i32, i32
  }
}

</mosaic_0001>

<bundles_post_ra>
// kernel: tpu_custom_call.1
= control target key start
LH: loop header
LB: loop body
LE: loop exit
PB: predicated region body
PF: predicated region fallthrough
CT: control target
= control target key end

     0   :  { %12 = vsyncpa [#allocation3], 0  ;;  %s2036_s0 = inlined_call_operand.vmem [shape: bf16[8,16,12], index: 0, kind: input, shape index: {}]   ;;  %s2037_s1 = inlined_call_operand.vmem [shape: bf16[12,64], index: 1, kind: input, shape index: {}]   ;;  %s2038_s2 = inlined_call_operand.vmem [shape: f32[1,64], index: 2, kind: input, shape index: {}]   ;;  %s2039_s3 = inlined_call_operand.vmem [shape: bf16[3,64,128], index: 3, kind: input, shape index: {}]   ;;  %s2040_s4 = inlined_call_operand.vmem [shape: f32[1,128], index: 4, kind: input, shape index: {}]   ;;  %s2041_s5 = inlined_call_operand.hbm [shape: bf16[384,128], index: 5, kind: input, shape index: {}]   ;;  %s2042_s6 = inlined_call_operand.vmem [shape: f32[1,128], index: 6, kind: input, shape index: {}]   ;;  %s2043_s7 = inlined_call_operand.hbm [shape: f32[8,128], index: 7, kind: output, shape index: {}]  }
   0x1   :  { %13 = vsyncpa [#allocation4], 0  ;;  %s28_s26 = sshll.u32 %s2041_s5, 4  ;;  %s1635_s27 = smov [#allocation2]   ;;  %s29_s26 = int_to_ptr.hbm [resolvable:$true] %s28_s26 }
   0x2   :  { %s30_s28 = sshll.u32 %s1635_s27, 4  ;;  %s1636_s29 = smov 64   ;;  %s31_s28 = int_to_ptr.vmem [resolvable:$true] %s30_s28 }
   0x3   :  { %s1637_s30 = smov 4  }
   0x4   :  { %36 = dma.hbm_to_vmem [thread:$0]  %s29_s26, 3072, %s31_s28, [#allocation3], %s1636_s29, %s1636_s29, %s1637_s30  }
   0x5   :  { %1631 = dma.done.wait [#allocation3], 3072  }
   0x6   :  { %1632 = vsyncadd [#allocation3], 4294964224  ;;  %v1353_v0 = vld [vmem:[%s2037_s1] sm:$0xf]  ;;  %v1539_v1 = vld [vmem:[%s2037_s1] sm:$0x30]  ;;  %v253_v31 = vlaneseq }
   0x7   :  { %vm136_vm0 = vcmask 1045504   ;;  %v1354_v2 = vor.u32 %v1539_v1, %v1353_v0  ;;  %v1531_v4 = vld [vmem:[%s2036_s0] sm:$0xff]  ;;  %vm111_vm1 = vcmask 97280   ;;  %v1532_v5 = vld [vmem:[%s2036_s0 + $0x8] sm:$0xff]  ;;  %v1533_v6 = vld [vmem:[%s2036_s0 + $0x10] sm:$0xff]  ;;  %vm304_vm2 = vcmask 523264  }
   0x8   :  { %v1534_v7 = vld [vmem:[%s2036_s0 + $0x18] sm:$0xff]  ;;  %v1535_v8 = vld [vmem:[%s2036_s0 + $0x20] sm:$0xff]  ;;  %v1536_v9 = vld [vmem:[%s2036_s0 + $0x28] sm:$0xff]  ;;  %v1767_v34 = vshrl.u32 %v253_v31, 7  ;;  %vm984_vm10 = vcmask 1041409   ;;  %vm986_vm11 = vcmask 1042434  }
   0x9   :  { %v138_v3 = vsel %vm136_vm0, %v1354_v2, 0  ;;  %v1543_v10 = vld [vmem:[%s2039_s3 + $0x18] sm:$0xff]  ;;  %v1537_v11 = vld [vmem:[%s2036_s0 + $0x30] sm:$0xff]  ;;  %v1541_v13 = vld [vmem:[%s2039_s3 + $0x8] sm:$0xff]  ;;  %vm988_vm12 = vcmask 1043459   ;;  %vm990_vm13 = vcmask 1044484  }
   0xa   :  { %147 = vmatpush.bf16.msra.mxu0 %v138_v3  ;;  %430 = vmatpush.bf16.msra.mxu2 %v1543_v10  ;;  %v1542_v12 = vld [vmem:[%s2039_s3 + $0x10] sm:$0xff]  ;;  %v1547_v14 = vld [vmem:[%s2039_s3 + $0x38] sm:$0xff]  ;;  %v1540_v16 = vld [vmem:[%s2039_s3] sm:$0xff]  ;;  %vm255_vm3 = vcmp.lt.s32.totalorder %v1767_v34, 7  ;;  %vm491_vm4 = vcmp.lt.s32.totalorder %v1767_v34, 6  ;;  %vm764_vm5 = vcmp.ge.s32.totalorder %v1767_v34, 1 }
   0xb   :  { %v1551_v15 = vld [vmem:[%s2039_s3 + $0x58] sm:$0xff]  ;;  %333 = vmatpush.bf16.msra.mxu1 %v1547_v14  ;;  %v1546_v17 = vld [vmem:[%s2039_s3 + $0x30] sm:$0xff]  ;;  %v1545_v20 = vld [vmem:[%s2039_s3 + $0x28] sm:$0xff]  ;;  %vm862_vm6 = vcmp.ge.s32.totalorder %v1767_v34, 2  ;;  %vm992_vm14 = vcmask 1045509   ;;  %vm994_vm15 = vcmask 1046534  }
   0xc   :  { %568 = vmatpush.bf16.msra.mxu3 %v1551_v15  ;;  %v1550_v18 = vld [vmem:[%s2039_s3 + $0x50] sm:$0xff]  ;;  %v1538_v19 = vld [vmem:[%s2036_s0 + $0x38] sm:$0xff]  ;;  %v1549_v21 = vld [vmem:[%s2039_s3 + $0x48] sm:$0xff]  ;;  %vm996_vm0 = vcmask 1047559   ;;  %s1638_s27 = smov [#allocation5]   ;;  %s1309_s8 = sshll.u32 %s2043_s7, 4  ;;  %s1310_s8 = int_to_ptr.hbm [resolvable:$true] %s1309_s8 }
   0xd   :  { %1355 = vmatmul.msk.bf16.vlgmr.msra.gmra.mxu0 %vm111_vm1, %v1531_v4  ;;  %v1544_v22 = vld [vmem:[%s2039_s3 + $0x20] sm:$0xff]  ;;  %s1307_s28 = sshll.u32 %s1638_s27, 4  ;;  %s1308_s28 = int_to_ptr.vmem [resolvable:$true] %s1307_s28 }
   0xe   :  { %431 = vmatpush.bf16.msra.mxu2 %v1542_v12  ;;  %v1548_v23 = vld [vmem:[%s2039_s3 + $0x40] sm:$0xff] }
   0xf   :  { %334 = vmatpush.bf16.msra.mxu1 %v1546_v17  ;;  %v1759_v25 = vld [vmem:[%s2038_s2] ss:$0 sm:$0xff] }
  0x10   :  { %569 = vmatpush.bf16.msra.mxu3 %v1550_v18 }
  0x12   :  { %432 = vmatpush.bf16.msra.mxu2 %v1541_v13 }
  0x13   :  { %335 = vmatpush.bf16.msra.mxu1 %v1545_v20 }
  0x14   :  { %570 = vmatpush.bf16.msra.mxu3 %v1549_v21 }
  0x16   :  { %433 = vmatpush.bf16.msra.mxu2 %v1540_v16 }
  0x17   :  { %336 = vmatpush.bf16.msra.mxu1 %v1544_v22 }
  0x18   :  { %571 = vmatpush.bf16.msra.mxu3 %v1548_v23 }
  0x1d   :  { %1356 = vmatmul.msk.bf16.gmra.mxu0 %vm111_vm1, %v1532_v5 }
  0x2d   :  { %1357 = vmatmul.msk.bf16.gmra.mxu0 %vm111_vm1, %v1533_v6 }
  0x3d   :  { %1358 = vmatmul.msk.bf16.gmra.mxu0 %vm111_vm1, %v1534_v7 }
  0x4d   :  { %1359 = vmatmul.msk.bf16.gmra.mxu0 %vm111_vm1, %v1535_v8 }
  0x5d   :  { %1360 = vmatmul.msk.bf16.gmra.mxu0 %vm111_vm1, %v1536_v9 }
  0x6d   :  { %1361 = vmatmul.msk.bf16.gmra.mxu0 %vm111_vm1, %v1537_v11 }
  0x7d   :  { %1362 = vmatmul.msk.bf16.gmra.mxu0 %vm111_vm1, %v1538_v19 }
  0x8a   :  { %v149_v24 = vpop.f32.mrf.mxu0 }
  0x8b   :  { %v150_v26 = vadd.f32 %v1759_v25, %v149_v24 }
  0x8d   :  { %v1763_v29 = vmax.f32 %v150_v26, 0.0 }
  0x8f   :  { %v237_v39 = vrot.slane %v1763_v29, 1  ;;  %v475_v40 = vrot.slane %v1763_v29, 2 }
  0x92   :  { %v151_v27 = vpop.f32.mrf.mxu0 }
  0x93   :  { %v152_v28 = vadd.f32 %v1759_v25, %v151_v27 }
  0x95   :  { %v190_v30 = vmax.f32 %v152_v28, 0.0 }
  0x97   :  { %v229_v32 = vpack.c.bf16 %v190_v30, %v1763_v29  ;;  %v238_v36 = vrot.slane %v190_v30, 1  ;;  %v476_v37 = vrot.slane %v190_v30, 2 }
  0x99   :  { %1403 = vmatmul.msk.bf16.vlgmr.msra.gmra.mxu2 %vm304_vm2, %v229_v32  ;;  %v270_v44 = vsel %vm255_vm3, %v237_v39, %v238_v36  ;;  %v506_v46 = vsel %vm491_vm4, %v475_v40, %v476_v37 }
  0x9a   :  { %v154_v33 = vpop.f32.mrf.mxu0 }
  0x9b   :  { %v155_v35 = vadd.f32 %v1759_v25, %v154_v33 }
  0x9d   :  { %v191_v38 = vmax.f32 %v155_v35, 0.0 }
  0x9f   :  { %v239_v41 = vrot.slane %v191_v38, 1  ;;  %v477_v42 = vrot.slane %v191_v38, 2 }
  0xa1   :  { %v269_v43 = vsel %vm255_vm3, %v238_v36, %v239_v41  ;;  %v505_v45 = vsel %vm491_vm4, %v476_v37, %v477_v42 }
  0xa2   :  { %v156_v47 = vpop.f32.mrf.mxu0  ;;  %v272_v48 = vpack.c.bf16 %v269_v43, %v270_v44  ;;  %v508_v49 = vpack.c.bf16 %v505_v45, %v506_v46 }
  0xa3   :  { %v157_v50 = vadd.f32 %v1759_v25, %v156_v47 }
  0xa4   :  { %1379 = vmatmul.msk.bf16.vlgmr.msra.gmra.mxu1 %vm304_vm2, %v272_v48  ;;  %1427 = vmatmul.msk.bf16.vlgmr.msra.gmra.mxu3 %vm304_vm2, %v508_v49 }
  0xa5   :  { %v192_v51 = vmax.f32 %v157_v50, 0.0 }
  0xa7   :  { %v230_v52 = vpack.c.bf16 %v192_v51, %v191_v38  ;;  %v240_v55 = vrot.slane %v192_v51, 1  ;;  %v478_v56 = vrot.slane %v192_v51, 2 }
  0xa9   :  { %1404 = vmatmul.msk.bf16.gmra.mxu2 %vm304_vm2, %v230_v52  ;;  %v268_v61 = vsel %vm255_vm3, %v239_v41, %v240_v55  ;;  %v504_v63 = vsel %vm491_vm4, %v477_v42, %v478_v56 }
  0xaa   :  { %v159_v53 = vpop.f32.mrf.mxu0 }
  0xab   :  { %v160_v54 = vadd.f32 %v1759_v25, %v159_v53 }
  0xad   :  { %v193_v57 = vmax.f32 %v160_v54, 0.0 }
  0xaf   :  { %v241_v58 = vrot.slane %v193_v57, 1  ;;  %v479_v59 = vrot.slane %v193_v57, 2 }
  0xb1   :  { %v267_v60 = vsel %vm255_vm3, %v240_v55, %v241_v58  ;;  %v503_v62 = vsel %vm491_vm4, %v478_v56, %v479_v59 }
  0xb2   :  { %v161_v0 = vpop.f32.mrf.mxu0  ;;  %v273_v1 = vpack.c.bf16 %v267_v60, %v268_v61  ;;  %v509_v2 = vpack.c.bf16 %v503_v62, %v504_v63 }
  0xb3   :  { %v162_v3 = vadd.f32 %v1759_v25, %v161_v0 }
  0xb4   :  { %1380 = vmatmul.msk.bf16.gmra.mxu1 %vm304_vm2, %v273_v1  ;;  %1428 = vmatmul.msk.bf16.gmra.mxu3 %vm304_vm2, %v509_v2 }
  0xb5   :  { %v194_v4 = vmax.f32 %v162_v3, 0.0 }
  0xb7   :  { %v231_v5 = vpack.c.bf16 %v194_v4, %v193_v57  ;;  %v242_v8 = vrot.slane %v194_v4, 1  ;;  %v480_v9 = vrot.slane %v194_v4, 2 }
  0xb9   :  { %1405 = vmatmul.msk.bf16.gmra.mxu2 %vm304_vm2, %v231_v5  ;;  %v266_v14 = vsel %vm255_vm3, %v241_v58, %v242_v8  ;;  %v502_v16 = vsel %vm491_vm4, %v479_v59, %v480_v9 }
  0xba   :  { %v164_v6 = vpop.f32.mrf.mxu0 }
  0xbb   :  { %v165_v7 = vadd.f32 %v1759_v25, %v164_v6 }
  0xbd   :  { %v195_v10 = vmax.f32 %v165_v7, 0.0 }
  0xbf   :  { %v243_v11 = vrot.slane %v195_v10, 1  ;;  %v481_v12 = vrot.slane %v195_v10, 2 }
  0xc1   :  { %v265_v13 = vsel %vm255_vm3, %v242_v8, %v243_v11  ;;  %v501_v15 = vsel %vm491_vm4, %v480_v9, %v481_v12 }
  0xc2   :  { %v166_v17 = vpop.f32.mrf.mxu0  ;;  %v274_v18 = vpack.c.bf16 %v265_v13, %v266_v14  ;;  %v510_v19 = vpack.c.bf16 %v501_v15, %v502_v16 }
  0xc3   :  { %v167_v20 = vadd.f32 %v1759_v25, %v166_v17 }
  0xc4   :  { %1381 = vmatmul.msk.bf16.gmra.mxu1 %vm304_vm2, %v274_v18  ;;  %1429 = vmatmul.msk.bf16.gmra.mxu3 %vm304_vm2, %v510_v19 }
  0xc5   :  { %v196_v21 = vmax.f32 %v167_v20, 0.0 }
  0xc7   :  { %v232_v22 = vpack.c.bf16 %v196_v21, %v195_v10  ;;  %v244_v26 = vrot.slane %v196_v21, 1  ;;  %v482_v27 = vrot.slane %v196_v21, 2 }
  0xc9   :  { %1406 = vmatmul.msk.bf16.gmra.mxu2 %vm304_vm2, %v232_v22  ;;  %v264_v33 = vsel %vm255_vm3, %v243_v11, %v244_v26  ;;  %v500_v36 = vsel %vm491_vm4, %v481_v12, %v482_v27 }
  0xca   :  { %v169_v23 = vpop.f32.mrf.mxu0 }
  0xcb   :  { %v170_v24 = vadd.f32 %v1759_v25, %v169_v23 }
  0xcd   :  { %v197_v28 = vmax.f32 %v170_v24, 0.0 }
  0xcf   :  { %v245_v30 = vrot.slane %v197_v28, 1  ;;  %v483_v31 = vrot.slane %v197_v28, 2 }
  0xd1   :  { %v263_v32 = vsel %vm255_vm3, %v244_v26, %v245_v30  ;;  %v499_v35 = vsel %vm491_vm4, %v482_v27, %v483_v31 }
  0xd2   :  { %v171_v37 = vpop.f32.mrf.mxu0  ;;  %v275_v38 = vpack.c.bf16 %v263_v32, %v264_v33  ;;  %v511_v41 = vpack.c.bf16 %v499_v35, %v500_v36 }
  0xd3   :  { %v172_v42 = vadd.f32 %v1759_v25, %v171_v37 }
  0xd4   :  { %1382 = vmatmul.msk.bf16.gmra.mxu1 %vm304_vm2, %v275_v38  ;;  %1430 = vmatmul.msk.bf16.gmra.mxu3 %vm304_vm2, %v511_v41 }
  0xd5   :  { %v198_v43 = vmax.f32 %v172_v42, 0.0 }
  0xd7   :  { %v233_v44 = vpack.c.bf16 %v198_v43, %v197_v28  ;;  %v246_v47 = vrot.slane %v198_v43, 1  ;;  %v484_v48 = vrot.slane %v198_v43, 2 }
  0xd9   :  { %1407 = vmatmul.msk.bf16.gmra.mxu2 %vm304_vm2, %v233_v44  ;;  %v262_v53 = vsel %vm255_vm3, %v245_v30, %v246_v47  ;;  %v498_v55 = vsel %vm491_vm4, %v483_v31, %v484_v48 }
  0xda   :  { %v174_v45 = vpop.f32.mrf.mxu0 }
  0xdb   :  { %v175_v46 = vadd.f32 %v1759_v25, %v174_v45 }
  0xdd   :  { %v199_v49 = vmax.f32 %v175_v46, 0.0 }
  0xdf   :  { %v247_v50 = vrot.slane %v199_v49, 1  ;;  %v485_v51 = vrot.slane %v199_v49, 2 }
  0xe1   :  { %v261_v52 = vsel %vm255_vm3, %v246_v47, %v247_v50  ;;  %v497_v54 = vsel %vm491_vm4, %v484_v48, %v485_v51 }
  0xe2   :  { %v176_v56 = vpop.f32.mrf.mxu0  ;;  %v276_v57 = vpack.c.bf16 %v261_v52, %v262_v53  ;;  %v512_v58 = vpack.c.bf16 %v497_v54, %v498_v55  ;;  %v1889_v53 = vadd.s32 8, %v1767_v34 }
  0xe3   :  { %v177_v59 = vadd.f32 %v1759_v25, %v176_v56 }
  0xe4   :  { %1383 = vmatmul.msk.bf16.gmra.mxu1 %vm304_vm2, %v276_v57  ;;  %1431 = vmatmul.msk.bf16.gmra.mxu3 %vm304_vm2, %v512_v58  ;;  %vm669_vm7 = vcmp.lt.s32.totalorder %v1889_v53, 10  ;;  %vm767_vm8 = vcmp.lt.s32.totalorder %v1889_v53, 11  ;;  %vm865_vm9 = vcmp.lt.s32.totalorder %v1889_v53, 12 }
  0xe5   :  { %v200_v60 = vmax.f32 %v177_v59, 0.0 }
  0xe7   :  { %v234_v61 = vpack.c.bf16 %v200_v60, %v199_v49  ;;  %v248_v0 = vrot.slane %v200_v60, 1  ;;  %v486_v1 = vrot.slane %v200_v60, 2  ;;  %v1885_v49 = vld [vmem:[%s2040_s4] ss:$0 sm:$0xff] }
  0xe9   :  { %1408 = vmatmul.msk.bf16.gmra.mxu2 %vm304_vm2, %v234_v61  ;;  %v260_v6 = vsel %vm255_vm3, %v247_v50, %v248_v0  ;;  %v496_v8 = vsel %vm491_vm4, %v485_v51, %v486_v1 }
  0xea   :  { %v179_v62 = vpop.f32.mrf.mxu0 }
  0xeb   :  { %v180_v63 = vadd.f32 %v1759_v25, %v179_v62 }
  0xed   :  { %v201_v2 = vmax.f32 %v180_v63, 0.0 }
  0xef   :  { %v249_v3 = vrot.slane %v201_v2, 1  ;;  %v487_v4 = vrot.slane %v201_v2, 2 }
  0xf1   :  { %v259_v5 = vsel %vm255_vm3, %v248_v0, %v249_v3  ;;  %v495_v7 = vsel %vm491_vm4, %v486_v1, %v487_v4 }
  0xf2   :  { %v181_v9 = vpop.f32.mrf.mxu0  ;;  %v277_v10 = vpack.c.bf16 %v259_v5, %v260_v6  ;;  %v513_v11 = vpack.c.bf16 %v495_v7, %v496_v8 }
  0xf3   :  { %v182_v12 = vadd.f32 %v1759_v25, %v181_v9 }
  0xf4   :  { %1384 = vmatmul.msk.bf16.gmra.mxu1 %vm304_vm2, %v277_v10  ;;  %1432 = vmatmul.msk.bf16.gmra.mxu3 %vm304_vm2, %v513_v11 }
  0xf5   :  { %v202_v13 = vmax.f32 %v182_v12, 0.0 }
  0xf7   :  { %v235_v14 = vpack.c.bf16 %v202_v13, %v201_v2  ;;  %v250_v17 = vrot.slane %v202_v13, 1  ;;  %v488_v18 = vrot.slane %v202_v13, 2 }
  0xf9   :  { %1409 = vmatmul.msk.bf16.gmra.mxu2 %vm304_vm2, %v235_v14  ;;  %v258_v23 = vsel %vm255_vm3, %v249_v3, %v250_v17  ;;  %v494_v26 = vsel %vm491_vm4, %v487_v4, %v488_v18 }
  0xfa   :  { %v184_v15 = vpop.f32.mrf.mxu0 }
  0xfb   :  { %v185_v16 = vadd.f32 %v1759_v25, %v184_v15 }
  0xfd   :  { %v203_v19 = vmax.f32 %v185_v16, 0.0  ;;  %v1575_v16 = vld [vmem:[#allocation2 + $0xb8] sm:$0xff] }
  0xfe   :  { %1288 = vmatpush.bf16.msrb.mxu2 %v1575_v16 }
  0xff   :  { %v251_v20 = vrot.slane %v203_v19, 1  ;;  %v489_v21 = vrot.slane %v203_v19, 2 }
 0x101   :  { %v257_v22 = vsel %vm255_vm3, %v250_v17, %v251_v20  ;;  %v493_v24 = vsel %vm491_vm4, %v488_v18, %v489_v21  ;;  %v1559_v17 = vld [vmem:[#allocation2 + $0x38] sm:$0xff] }
 0x102   :  { %v186_v27 = vpop.f32.mrf.mxu0  ;;  %v278_v28 = vpack.c.bf16 %v257_v22, %v258_v23  ;;  %v514_v30 = vpack.c.bf16 %v493_v24, %v494_v26  ;;  %v1567_v18 = vld [vmem:[#allocation2 + $0x78] sm:$0xff]  ;;  %1262 = vmatpush.bf16.msrb.mxu0 %v1559_v17 }
 0x103   :  { %v187_v31 = vadd.f32 %v1759_v25, %v186_v27  ;;  %1275 = vmatpush.bf16.msrb.mxu1 %v1567_v18 }
 0x104   :  { %1385 = vmatmul.msk.bf16.gmra.mxu1 %vm304_vm2, %v278_v28  ;;  %1433 = vmatmul.msk.bf16.gmra.mxu3 %vm304_vm2, %v514_v30 }
 0x105   :  { %v204_v32 = vmax.f32 %v187_v31, 0.0 }
 0x107   :  { %v236_v33 = vpack.c.bf16 %v204_v32, %v203_v19  ;;  %v252_v35 = vrot.slane %v204_v32, 1  ;;  %v490_v36 = vrot.slane %v204_v32, 2 }
 0x109   :  { %1410 = vmatmul.msk.bf16.gmra.mxu2 %vm304_vm2, %v236_v33  ;;  %v256_v37 = vsel %vm255_vm3, %v251_v20, %v252_v35  ;;  %v271_v38 = vsel %vm255_vm3, %v252_v35, %v237_v39  ;;  %v492_v25 = vsel %vm491_vm4, %v489_v21, %v490_v36  ;;  %v507_v41 = vsel %vm491_vm4, %v490_v36, %v475_v40 }
 0x10a   :  { %v279_v42 = vpack.c.bf16 %v271_v38, %v256_v37  ;;  %v515_v43 = vpack.c.bf16 %v507_v41, %v492_v25 }
 0x114   :  { %1386 = vmatmul.msk.bf16.gmra.mxu1 %vm304_vm2, %v279_v42  ;;  %1434 = vmatmul.msk.bf16.gmra.mxu3 %vm304_vm2, %v515_v43 }
 0x11c   :  { %v435_v44 = vpop.f32.mrf.mxu2 }
 0x121   :  { %v338_v45 = vpop.f32.mrf.mxu1 }
 0x122   :  { %v436_v46 = vadd.f32 %v435_v44, %v338_v45 }
 0x124   :  { %v437_v47 = vpop.f32.mrf.mxu2 }
 0x127   :  { %v573_v48 = vpop.f32.mrf.mxu3 }
 0x128   :  { %v613_v39 = vadd.f32 %v573_v48, %v436_v46 }
 0x129   :  { %v340_v29 = vpop.f32.mrf.mxu1 }
 0x12a   :  { %v438_v50 = vadd.f32 %v437_v47, %v340_v29  ;;  %v633_v51 = vadd.f32 %v1885_v49, %v613_v39 }
 0x12c   :  { %v440_v40 = vpop.f32.mrf.mxu2  ;;  %v649_v55 = vmax.f32 %v633_v51, 0.0 }
 0x12e   :  { %v774_v61 = vsel %vm764_vm5, %v649_v55, 0.0  ;;  %v872_v62 = vsel %vm862_vm6, %v649_v55, 0.0 }
 0x12f   :  { %v575_v52 = vpop.f32.mrf.mxu3 }
 0x130   :  { %v614_v54 = vadd.f32 %v575_v52, %v438_v50 }
 0x131   :  { %v343_v56 = vpop.f32.mrf.mxu1 }
 0x132   :  { %v634_v57 = vadd.f32 %v1885_v49, %v614_v54  ;;  %v441_v58 = vadd.f32 %v440_v40, %v343_v56 }
 0x134   :  { %v650_v59 = vmax.f32 %v634_v57, 0.0  ;;  %v442_v60 = vpop.f32.mrf.mxu2 }
 0x136   :  { %v677_v63 = vsel %vm669_vm7, %v650_v59, 0.0  ;;  %v775_v0 = vsel %vm767_vm8, %v650_v59, 0.0  ;;  %v873_v1 = vsel %vm865_vm9, %v650_v59, 0.0 }
 0x137   :  { %v692_v2 = vadd.f32 %v677_v63, %v649_v55  ;;  %v790_v3 = vadd.f32 %v775_v0, %v774_v61  ;;  %v888_v4 = vadd.f32 %v873_v1, %v872_v62  ;;  %v578_v5 = vpop.f32.mrf.mxu3  ;;  %v1574_v0 = vld [vmem:[#allocation2 + $0xb0] sm:$0xff] }
 0x138   :  { %v615_v6 = vadd.f32 %v578_v5, %v441_v58  ;;  %v1558_v1 = vld [vmem:[#allocation2 + $0x30] sm:$0xff]  ;;  %1289 = vmatpush.bf16.msrb.mxu2 %v1574_v0 }
 0x139   :  { %v693_v7 = vrot.slane %v692_v2, 4  ;;  %v791_v8 = vrot.slane %v790_v3, 4  ;;  %v889_v9 = vrot.slane %v888_v4, 4  ;;  %v345_v10 = vpop.f32.mrf.mxu1  ;;  %1263 = vmatpush.bf16.msrb.mxu0 %v1558_v1 }
 0x13a   :  { %v443_v11 = vadd.f32 %v442_v60, %v345_v10  ;;  %v635_v23 = vadd.f32 %v1885_v49, %v615_v6 }
 0x13b   :  { %v694_v12 = vadd.f32 %v693_v7, %v692_v2  ;;  %v792_v13 = vadd.f32 %v791_v8, %v790_v3  ;;  %v890_v14 = vadd.f32 %v889_v9, %v888_v4  ;;  %v1566_v2 = vld [vmem:[#allocation2 + $0x70] sm:$0xff] }
 0x13c   :  { %v445_v15 = vpop.f32.mrf.mxu2  ;;  %v651_v35 = vmax.f32 %v635_v23, 0.0  ;;  %1276 = vmatpush.bf16.msrb.mxu1 %v1566_v2 }
 0x13d   :  { %v695_v19 = vrot.slane %v694_v12, 2  ;;  %v793_v20 = vrot.slane %v792_v13, 2  ;;  %v891_v21 = vrot.slane %v890_v14, 2 }
 0x13e   :  { %v776_v45 = vsel %vm764_vm5, %v651_v35, 0.0  ;;  %v874_v46 = vsel %vm862_vm6, %v651_v35, 0.0 }
 0x13f   :  { %v696_v22 = vadd.f32 %v695_v19, %v694_v12  ;;  %v580_v24 = vpop.f32.mrf.mxu3  ;;  %v794_v26 = vadd.f32 %v793_v20, %v792_v13  ;;  %v892_v28 = vadd.f32 %v891_v21, %v890_v14 }
 0x140   :  { %v616_v27 = vadd.f32 %v580_v24, %v443_v11 }
 0x141   :  { %v348_v30 = vpop.f32.mrf.mxu1  ;;  %v697_v33 = vrot.slane %v696_v22, 1  ;;  %v795_v36 = vrot.slane %v794_v26, 1  ;;  %v893_v25 = vrot.slane %v892_v28, 1 }
 0x142   :  { %v636_v31 = vadd.f32 %v1885_v49, %v616_v27  ;;  %v446_v32 = vadd.f32 %v445_v15, %v348_v30 }
 0x143   :  { %v698_v44 = vadd.f32 %v697_v33, %v696_v22  ;;  %v796_v39 = vadd.f32 %v795_v36, %v794_v26  ;;  %v894_v51 = vadd.f32 %v893_v25, %v892_v28 }
 0x144   :  { %v652_v37 = vmax.f32 %v636_v31, 0.0  ;;  %v447_v38 = vpop.f32.mrf.mxu2 }
 0x145   :  { %v748_v58 = vmul.f32 0.1, %v698_v44  ;;  %v846_v60 = vmul.f32 0.1, %v796_v39  ;;  %v944_v3 = vmul.f32 0.1, %v894_v51 }
 0x146   :  { %v679_v41 = vsel %vm669_vm7, %v652_v37, 0.0  ;;  %v777_v42 = vsel %vm767_vm8, %v652_v37, 0.0  ;;  %v875_v43 = vsel %vm865_vm9, %v652_v37, 0.0 }
 0x147   :  { %v699_v47 = vadd.f32 %v679_v41, %v651_v35  ;;  %v583_v48 = vpop.f32.mrf.mxu3  ;;  %v797_v29 = vadd.f32 %v777_v42, %v776_v45  ;;  %v895_v50 = vadd.f32 %v875_v43, %v874_v46  ;;  %v756_v8 = vpack.c.bf16 %v748_v58, %v748_v58 }
 0x148   :  { %v617_v40 = vadd.f32 %v583_v48, %v446_v32  ;;  %v854_v11 = vpack.c.bf16 %v846_v60, %v846_v60  ;;  %v952_v15 = vpack.c.bf16 %v944_v3, %v944_v3  ;;  %v1573_v3 = vld [vmem:[#allocation2 + $0xa8] sm:$0xff] }
 0x149   :  { %v700_v52 = vrot.slane %v699_v47, 4  ;;  %v350_v54 = vpop.f32.mrf.mxu1  ;;  %v798_v55 = vrot.slane %v797_v29, 4  ;;  %v896_v56 = vrot.slane %v895_v50, 4  ;;  %v968_v23 = vperm.slane %v756_v8, 0  ;;  %1290 = vmatpush.bf16.msrb.mxu2 %v1573_v3 }
 0x14a   :  { %v448_v57 = vadd.f32 %v447_v38, %v350_v54  ;;  %v637_v5 = vadd.f32 %v1885_v49, %v617_v40  ;;  %v1008_v26 = vperm.slane %v854_v11, 0  ;;  %v1041_v32 = vperm.slane %v952_v15, 0 }
 0x14b   :  { %v701_v59 = vadd.f32 %v700_v52, %v699_v47  ;;  %v799_v61 = vadd.f32 %v798_v55, %v797_v29  ;;  %v897_v62 = vadd.f32 %v896_v56, %v895_v50  ;;  %v976_v54 = vunpack.c.l.b16 %v968_v23 }
 0x14c   :  { %v450_v63 = vpop.f32.mrf.mxu2  ;;  %v653_v17 = vmax.f32 %v637_v5, 0.0  ;;  %v1016_v58 = vunpack.c.l.b16 %v1008_v26  ;;  %v1565_v5 = vld [vmem:[#allocation2 + $0x68] sm:$0xff] }
 0x14d   :  { %v702_v4 = vrot.slane %v701_v59, 2  ;;  %v800_v6 = vrot.slane %v799_v61, 2  ;;  %v898_v7 = vrot.slane %v897_v62, 2  ;;  %1277 = vmatpush.bf16.msrb.mxu1 %v1565_v5 }
 0x14e   :  { %v778_v35 = vsel %vm764_vm5, %v653_v17, 0.0  ;;  %v876_v36 = vsel %vm862_vm6, %v653_v17, 0.0 }
 0x14f   :  { %v703_v9 = vadd.f32 %v702_v4, %v701_v59  ;;  %v585_v10 = vpop.f32.mrf.mxu3  ;;  %v801_v12 = vadd.f32 %v800_v6, %v799_v61  ;;  %v899_v13 = vadd.f32 %v898_v7, %v897_v62  ;;  %v1049_v62 = vunpack.c.l.b16 %v1041_v32  ;;  %v1557_v4 = vld [vmem:[#allocation2 + $0x28] sm:$0xff] }
 0x150   :  { %v618_v14 = vadd.f32 %v585_v10, %v448_v57  ;;  %1264 = vmatpush.bf16.msrb.mxu0 %v1557_v4 }
 0x151   :  { %v704_v16 = vrot.slane %v703_v9, 1  ;;  %v353_v18 = vpop.f32.mrf.mxu1  ;;  %v802_v19 = vrot.slane %v801_v12, 1  ;;  %v900_v20 = vrot.slane %v899_v13, 1 }
 0x152   :  { %v638_v21 = vadd.f32 %v1885_v49, %v618_v14  ;;  %v451_v22 = vadd.f32 %v450_v63, %v353_v18 }
 0x153   :  { %v705_v24 = vadd.f32 %v704_v16, %v703_v9  ;;  %v803_v27 = vadd.f32 %v802_v19, %v801_v12  ;;  %v901_v28 = vadd.f32 %v900_v20, %v899_v13 }
 0x154   :  { %v654_v30 = vmax.f32 %v638_v21, 0.0  ;;  %v452_v31 = vpop.f32.mrf.mxu2 }
 0x155   :  { %v749_v33 = vmul.f32 0.1, %v705_v24  ;;  %v847_v37 = vmul.f32 0.1, %v803_v27  ;;  %v945_v38 = vmul.f32 0.1, %v901_v28 }
 0x156   :  { %v681_v25 = vsel %vm669_vm7, %v654_v30, 0.0  ;;  %v779_v41 = vsel %vm767_vm8, %v654_v30, 0.0  ;;  %v877_v45 = vsel %vm865_vm9, %v654_v30, 0.0 }
 0x157   :  { %v757_v42 = vpack.c.bf16 %v749_v33, %v749_v33  ;;  %v706_v43 = vadd.f32 %v681_v25, %v653_v17  ;;  %v804_v44 = vadd.f32 %v779_v41, %v778_v35  ;;  %v588_v46 = vpop.f32.mrf.mxu3  ;;  %v855_v47 = vpack.c.bf16 %v847_v37, %v847_v37 }
 0x158   :  { %v953_v48 = vpack.c.bf16 %v945_v38, %v945_v38  ;;  %v902_v39 = vadd.f32 %v877_v45, %v876_v36  ;;  %v619_v29 = vadd.f32 %v588_v46, %v451_v22 }
 0x159   :  { %v969_v50 = vperm.slane %v757_v42, 0  ;;  %v707_v40 = vrot.slane %v706_v43, 4  ;;  %v805_v51 = vrot.slane %v804_v44, 4  ;;  %v355_v52 = vpop.f32.mrf.mxu1  ;;  %v1009_v55 = vperm.slane %v855_v47, 0 }
 0x15a   :  { %v1042_v56 = vperm.slane %v953_v48, 0  ;;  %v903_v57 = vrot.slane %v902_v39, 4  ;;  %v639_v8 = vadd.f32 %v1885_v49, %v619_v29  ;;  %v453_v11 = vadd.f32 %v452_v31, %v355_v52  ;;  %v1556_v29 = vld [vmem:[#allocation2 + $0x20] sm:$0xff] }
 0x15b   :  { %v977_v59 = vunpack.c.l.b16 %v969_v50  ;;  %v708_v60 = vadd.f32 %v707_v40, %v706_v43  ;;  %v806_v61 = vadd.f32 %v805_v51, %v804_v44  ;;  %v1017_v63 = vunpack.c.l.b16 %v1009_v55  ;;  %v1564_v50 = vld [vmem:[#allocation2 + $0x60] sm:$0xff]  ;;  %1265 = vmatpush.bf16.msrb.mxu0 %v1556_v29 }
 0x15c   :  { %v1050_v0 = vunpack.c.l.b16 %v1042_v56  ;;  %v904_v1 = vadd.f32 %v903_v57, %v902_v39  ;;  %v1931_v2 = vpop.f32.mrf.mxu2  ;;  %v655_v21 = vmax.f32 %v639_v8, 0.0  ;;  %v1572_v39 = vld [vmem:[#allocation2 + $0xa0] sm:$0xff]  ;;  %1278 = vmatpush.bf16.msrb.mxu1 %v1564_v50 }
 0x15d   :  { %v709_v6 = vrot.slane %v708_v60, 2  ;;  %v807_v7 = vrot.slane %v806_v61, 2  ;;  %v1935_v9 = vsel %vm984_vm10, %v977_v59, %v976_v54  ;;  %v1024_v12 = vsel %vm984_vm10, %v1017_v63, %v1016_v58  ;;  %1291 = vmatpush.bf16.msrb.mxu2 %v1572_v39 }
 0x15e   :  { %v905_v10 = vrot.slane %v904_v1, 2  ;;  %v1057_v16 = vsel %vm984_vm10, %v1050_v0, %v1049_v62  ;;  %v780_v35 = vsel %vm764_vm5, %v655_v21, 0.0  ;;  %v878_v36 = vsel %vm862_vm6, %v655_v21, 0.0 }
 0x15f   :  { %v710_v13 = vadd.f32 %v709_v6, %v708_v60  ;;  %v808_v14 = vadd.f32 %v807_v7, %v806_v61  ;;  %v590_v15 = vpop.f32.mrf.mxu3 }
 0x160   :  { %v906_v17 = vadd.f32 %v905_v10, %v904_v1  ;;  %v620_v18 = vadd.f32 %v590_v15, %v453_v11 }
 0x161   :  { %v711_v19 = vrot.slane %v710_v13, 1  ;;  %v809_v20 = vrot.slane %v808_v14, 1  ;;  %v1939_v22 = vpop.f32.mrf.mxu1 }
 0x162   :  { %v907_v23 = vrot.slane %v906_v17, 1  ;;  %v640_v24 = vadd.f32 %v1885_v49, %v620_v18 }
 0x163   :  { %v712_v26 = vadd.f32 %v711_v19, %v710_v13  ;;  %v810_v27 = vadd.f32 %v809_v20, %v808_v14 }
 0x164   :  { %v908_v28 = vadd.f32 %v907_v23, %v906_v17  ;;  %v656_v30 = vmax.f32 %v640_v24, 0.0  ;;  %v1942_v31 = vpop.f32.mrf.mxu2  ;;  %v1571_v23 = vld [vmem:[#allocation2 + $0x98] sm:$0xff] }
 0x165   :  { %v750_v32 = vmul.f32 0.1, %v712_v26  ;;  %v848_v33 = vmul.f32 0.1, %v810_v27  ;;  %v1555_v24 = vld [vmem:[#allocation2 + $0x18] sm:$0xff]  ;;  %1292 = vmatpush.bf16.msrb.mxu2 %v1571_v23 }
 0x166   :  { %v946_v37 = vmul.f32 0.1, %v908_v28  ;;  %v683_v38 = vsel %vm669_vm7, %v656_v30, 0.0  ;;  %v781_v25 = vsel %vm767_vm8, %v656_v30, 0.0  ;;  %v879_v41 = vsel %vm865_vm9, %v656_v30, 0.0  ;;  %v1563_v26 = vld [vmem:[#allocation2 + $0x58] sm:$0xff]  ;;  %1266 = vmatpush.bf16.msrb.mxu0 %v1555_v24 }
 0x167   :  { %v758_v42 = vpack.c.bf16 %v750_v32, %v750_v32  ;;  %v856_v43 = vpack.c.bf16 %v848_v33, %v848_v33  ;;  %v713_v44 = vadd.f32 %v683_v38, %v655_v21  ;;  %v811_v45 = vadd.f32 %v781_v25, %v780_v35  ;;  %v1954_v46 = vpop.f32.mrf.mxu3  ;;  %1279 = vmatpush.bf16.msrb.mxu1 %v1563_v26 }
 0x168   :  { %v954_v47 = vpack.c.bf16 %v946_v37, %v946_v37  ;;  %v909_v48 = vadd.f32 %v879_v41, %v878_v36  ;;  %v456_v38 = vadd.f32 %v1931_v2, %v1939_v22 }
 0x169   :  { %v970_v40 = vperm.slane %v758_v42, 0  ;;  %v1010_v51 = vperm.slane %v856_v43, 0  ;;  %v714_v52 = vrot.slane %v713_v44, 4  ;;  %v812_v54 = vrot.slane %v811_v45, 4  ;;  %v360_v55 = vpop.f32.mrf.mxu1 }
 0x16a   :  { %v1043_v56 = vperm.slane %v954_v47, 0  ;;  %v910_v57 = vrot.slane %v909_v48, 4 }
 0x16b   :  { %v978_v58 = vunpack.c.l.b16 %v970_v40  ;;  %v1018_v59 = vunpack.c.l.b16 %v1010_v51  ;;  %v715_v60 = vadd.f32 %v714_v52, %v713_v44  ;;  %v813_v61 = vadd.f32 %v812_v54, %v811_v45 }
 0x16c   :  { %v1051_v62 = vunpack.c.l.b16 %v1043_v56  ;;  %v911_v63 = vadd.f32 %v910_v57, %v909_v48  ;;  %v460_v0 = vpop.f32.mrf.mxu2  ;;  %v621_v45 = vadd.f32 %v1954_v46, %v456_v38  ;;  %v1570_v46 = vld [vmem:[#allocation2 + $0x90] sm:$0xff] }
 0x16d   :  { %v716_v1 = vrot.slane %v715_v60, 2  ;;  %v814_v3 = vrot.slane %v813_v61, 2  ;;  %v987_v4 = vsel %vm986_vm11, %v978_v58, %v1935_v9  ;;  %v1025_v6 = vsel %vm986_vm11, %v1018_v59, %v1024_v12  ;;  %v1554_v57 = vld [vmem:[#allocation2 + $0x10] sm:$0xff]  ;;  %1293 = vmatpush.bf16.msrb.mxu2 %v1570_v46 }
 0x16e   :  { %v912_v5 = vrot.slane %v911_v63, 2  ;;  %v1058_v11 = vsel %vm986_vm11, %v1051_v62, %v1057_v16  ;;  %v458_v16 = vadd.f32 %v1942_v31, %v360_v55  ;;  %v641_v40 = vadd.f32 %v1885_v49, %v621_v45  ;;  %v1562_v58 = vld [vmem:[#allocation2 + $0x50] sm:$0xff]  ;;  %1267 = vmatpush.bf16.msrb.mxu0 %v1554_v57 }
 0x16f   :  { %v717_v7 = vadd.f32 %v716_v1, %v715_v60  ;;  %v815_v8 = vadd.f32 %v814_v3, %v813_v61  ;;  %v595_v10 = vpop.f32.mrf.mxu3  ;;  %1280 = vmatpush.bf16.msrb.mxu1 %v1562_v58 }
 0x170   :  { %v913_v13 = vadd.f32 %v912_v5, %v911_v63  ;;  %v622_v25 = vadd.f32 %v595_v10, %v458_v16  ;;  %v657_v60 = vmax.f32 %v641_v40, 0.0  ;;  %v1569_v16 = vld [vmem:[#allocation2 + $0x88] sm:$0xff] }
 0x171   :  { %v718_v14 = vrot.slane %v717_v7, 1  ;;  %v816_v15 = vrot.slane %v815_v8, 1  ;;  %v363_v17 = vpop.f32.mrf.mxu1  ;;  %1294 = vmatpush.bf16.msrb.mxu2 %v1569_v16 }
 0x172   :  { %v914_v18 = vrot.slane %v913_v13, 1  ;;  %v642_v48 = vadd.f32 %v1885_v49, %v622_v25  ;;  %v461_v31 = vadd.f32 %v460_v0, %v363_v17  ;;  %v782_v3 = vsel %vm764_vm5, %v657_v60, 0.0 }
 0x173   :  { %v719_v19 = vadd.f32 %v718_v14, %v717_v7  ;;  %v817_v20 = vadd.f32 %v816_v15, %v815_v8  ;;  %v880_v7 = vsel %vm862_vm6, %v657_v60, 0.0 }
 0x174   :  { %v915_v21 = vadd.f32 %v914_v18, %v913_v13  ;;  %v462_v28 = vpop.f32.mrf.mxu2  ;;  %v658_v55 = vmax.f32 %v642_v48, 0.0  ;;  %v1552_v48 = vld [vmem:[#allocation2] sm:$0xff] }
 0x175   :  { %v751_v9 = vmul.f32 0.1, %v719_v19  ;;  %v849_v27 = vmul.f32 0.1, %v817_v20 }
 0x176   :  { %v947_v12 = vmul.f32 0.1, %v915_v21  ;;  %v685_v62 = vsel %vm669_vm7, %v658_v55, 0.0  ;;  %v783_v63 = vsel %vm767_vm8, %v658_v55, 0.0  ;;  %v881_v1 = vsel %vm865_vm9, %v658_v55, 0.0 }
 0x177   :  { %v759_v30 = vpack.c.bf16 %v751_v9, %v751_v9  ;;  %v857_v32 = vpack.c.bf16 %v849_v27, %v849_v27  ;;  %v598_v33 = vpop.f32.mrf.mxu3  ;;  %v720_v8 = vadd.f32 %v685_v62, %v657_v60  ;;  %v818_v10 = vadd.f32 %v783_v63, %v782_v3 }
 0x178   :  { %v955_v35 = vpack.c.bf16 %v947_v12, %v947_v12  ;;  %v623_v2 = vadd.f32 %v598_v33, %v461_v31  ;;  %v1553_v33 = vld [vmem:[#allocation2 + $0x8] sm:$0xff] }
 0x179   :  { %v971_v36 = vperm.slane %v759_v30, 0  ;;  %v1011_v37 = vperm.slane %v857_v32, 0  ;;  %v365_v41 = vpop.f32.mrf.mxu1  ;;  %v721_v21 = vrot.slane %v720_v8, 4  ;;  %v819_v9 = vrot.slane %v818_v10, 4  ;;  %1268 = vmatpush.bf16.msrb.mxu0 %v1553_v33 }
 0x17a   :  { %v1044_v42 = vperm.slane %v955_v35, 0  ;;  %v463_v29 = vadd.f32 %v462_v28, %v365_v41  ;;  %v643_v61 = vadd.f32 %v1885_v49, %v623_v2  ;;  %v1561_v35 = vld [vmem:[#allocation2 + $0x48] sm:$0xff] }
 0x17b   :  { %v979_v43 = vunpack.c.l.b16 %v971_v36  ;;  %v1019_v44 = vunpack.c.l.b16 %v1011_v37  ;;  %v722_v36 = vadd.f32 %v721_v21, %v720_v8  ;;  %v820_v41 = vadd.f32 %v819_v9, %v818_v10  ;;  %1281 = vmatpush.bf16.msrb.mxu1 %v1561_v35 }
 0x17c   :  { %v1052_v47 = vunpack.c.l.b16 %v1044_v42  ;;  %v465_v22 = vpop.f32.mrf.mxu2 }
 0x17d   :  { %v1965_v39 = vsel %vm988_vm12, %v979_v43, %v987_v4  ;;  %v1967_v50 = vsel %vm988_vm12, %v1019_v44, %v1025_v6  ;;  %v659_v4 = vmax.f32 %v643_v61, 0.0  ;;  %v723_v2 = vrot.slane %v722_v36, 2  ;;  %1269 = vmatpush.bf16.msrb.mxu0 %v1552_v48 }
 0x17e   :  { %v1970_v52 = vsel %vm988_vm12, %v1052_v47, %v1058_v11  ;;  %v916_v11 = vadd.f32 %v881_v1, %v880_v7  ;;  %v1568_v47 = vld [vmem:[#allocation2 + $0x80] sm:$0xff]  ;;  %v821_v55 = vrot.slane %v820_v41, 2 }
 0x17f   :  { %v600_v51 = vpop.f32.mrf.mxu3  ;;  %v784_v20 = vsel %vm764_vm5, %v659_v4, 0.0  ;;  %v882_v23 = vsel %vm862_vm6, %v659_v4, 0.0  ;;  %1295 = vmatpush.bf16.msrb.mxu2 %v1568_v47 }
 0x180   :  { %v624_v54 = vadd.f32 %v600_v51, %v463_v29  ;;  %v917_v27 = vrot.slane %v916_v11, 4  ;;  %v1560_v29 = vld [vmem:[#allocation2 + $0x40] sm:$0xff] }
 0x181   :  { %v368_v56 = vpop.f32.mrf.mxu1  ;;  %1282 = vmatpush.bf16.msrb.mxu1 %v1560_v29 }
 0x182   :  { %v644_v59 = vadd.f32 %v1885_v49, %v624_v54  ;;  %v466_v5 = vadd.f32 %v465_v22, %v368_v56  ;;  %v918_v42 = vadd.f32 %v917_v27, %v916_v11 }
 0x184   :  { %v660_v0 = vmax.f32 %v644_v59, 0.0  ;;  %v467_v15 = vpop.f32.mrf.mxu2  ;;  %v919_v56 = vrot.slane %v918_v42, 2 }
 0x186   :  { %v687_v13 = vsel %vm669_vm7, %v660_v0, 0.0  ;;  %v785_v14 = vsel %vm767_vm8, %v660_v0, 0.0  ;;  %v883_v19 = vsel %vm865_vm9, %v660_v0, 0.0 }
 0x187   :  { %v603_v6 = vpop.f32.mrf.mxu3  ;;  %v727_v24 = vadd.f32 %v687_v13, %v659_v4  ;;  %v825_v26 = vadd.f32 %v785_v14, %v784_v20  ;;  %v923_v28 = vadd.f32 %v883_v19, %v882_v23  ;;  %v724_v4 = vadd.f32 %v723_v2, %v722_v36 }
 0x188   :  { %v625_v17 = vadd.f32 %v603_v6, %v466_v5  ;;  %v822_v13 = vadd.f32 %v821_v55, %v820_v41  ;;  %v920_v14 = vadd.f32 %v919_v56, %v918_v42 }
 0x189   :  { %v370_v18 = vpop.f32.mrf.mxu1  ;;  %v728_v37 = vrot.slane %v727_v24, 4  ;;  %v826_v38 = vrot.slane %v825_v26, 4  ;;  %v924_v43 = vrot.slane %v923_v28, 4  ;;  %v725_v21 = vrot.slane %v724_v4, 1 }
 0x18a   :  { %v645_v12 = vadd.f32 %v1885_v49, %v625_v17  ;;  %v468_v30 = vadd.f32 %v467_v15, %v370_v18  ;;  %v921_v16 = vrot.slane %v920_v14, 1 }
 0x18b   :  { %v729_v22 = vadd.f32 %v728_v37, %v727_v24  ;;  %v827_v51 = vadd.f32 %v826_v38, %v825_v26  ;;  %v925_v46 = vadd.f32 %v924_v43, %v923_v28  ;;  %v726_v41 = vadd.f32 %v725_v21, %v724_v4 }
 0x18c   :  { %v661_v44 = vmax.f32 %v645_v12, 0.0  ;;  %v470_v40 = vpop.f32.mrf.mxu2  ;;  %v922_v48 = vadd.f32 %v921_v16, %v920_v14 }
 0x18d   :  { %v730_v5 = vrot.slane %v729_v22, 2  ;;  %v828_v6 = vrot.slane %v827_v51, 2  ;;  %v926_v15 = vrot.slane %v925_v46, 2 }
 0x18e   :  { %v786_v57 = vsel %vm764_vm5, %v661_v44, 0.0  ;;  %v884_v58 = vsel %vm862_vm6, %v661_v44, 0.0 }
 0x18f   :  { %v605_v32 = vpop.f32.mrf.mxu3  ;;  %v731_v23 = vadd.f32 %v730_v5, %v729_v22  ;;  %v829_v24 = vadd.f32 %v828_v6, %v827_v51  ;;  %v927_v33 = vadd.f32 %v926_v15, %v925_v46  ;;  %v752_v51 = vmul.f32 0.1, %v726_v41 }
 0x190   :  { %v626_v25 = vadd.f32 %v605_v32, %v468_v30  ;;  %v823_v32 = vrot.slane %v822_v13, 1 }
 0x191   :  { %v373_v45 = vpop.f32.mrf.mxu1  ;;  %v732_v42 = vrot.slane %v731_v23, 1  ;;  %v830_v43 = vrot.slane %v829_v24, 1  ;;  %v760_v6 = vpack.c.bf16 %v752_v51, %v752_v51 }
 0x192   :  { %v646_v31 = vadd.f32 %v1885_v49, %v626_v25  ;;  %v471_v1 = vadd.f32 %v470_v40, %v373_v45  ;;  %v824_v47 = vadd.f32 %v823_v32, %v822_v13 }
 0x193   :  { %v831_v55 = vadd.f32 %v830_v43, %v829_v24 }
 0x194   :  { %v662_v54 = vmax.f32 %v646_v31, 0.0  ;;  %v472_v28 = vpop.f32.mrf.mxu2  ;;  %v928_v31 = vrot.slane %v927_v33, 1 }
 0x196   :  { %v689_v59 = vsel %vm669_vm7, %v662_v54, 0.0  ;;  %v787_v60 = vsel %vm767_vm8, %v662_v54, 0.0  ;;  %v885_v61 = vsel %vm865_vm9, %v662_v54, 0.0  ;;  %v733_v54 = vadd.f32 %v732_v42, %v731_v23 }
 0x197   :  { %v734_v62 = vadd.f32 %v689_v59, %v661_v44  ;;  %v832_v63 = vadd.f32 %v787_v60, %v786_v57  ;;  %v930_v0 = vadd.f32 %v885_v61, %v884_v58  ;;  %v608_v3 = vpop.f32.mrf.mxu3  ;;  %v929_v59 = vadd.f32 %v928_v31, %v927_v33 }
 0x198   :  { %v627_v11 = vadd.f32 %v608_v3, %v471_v1  ;;  %v850_v3 = vmul.f32 0.1, %v824_v47 }
 0x199   :  { %v735_v7 = vrot.slane %v734_v62, 4  ;;  %v833_v8 = vrot.slane %v832_v63, 4  ;;  %v931_v10 = vrot.slane %v930_v0, 4  ;;  %v375_v20 = vpop.f32.mrf.mxu1  ;;  %v949_v53 = vmul.f32 0.1, %v929_v59 }
 0x19a   :  { %v647_v12 = vadd.f32 %v1885_v49, %v627_v11  ;;  %v473_v30 = vadd.f32 %v472_v28, %v375_v20 }
 0x19b   :  { %v736_v17 = vadd.f32 %v735_v7, %v734_v62  ;;  %v834_v18 = vadd.f32 %v833_v8, %v832_v63  ;;  %v932_v19 = vadd.f32 %v931_v10, %v930_v0  ;;  %v948_v7 = vmul.f32 0.1, %v922_v48 }
 0x19c   :  { %v663_v44 = vmax.f32 %v647_v12, 0.0  ;;  %v753_v8 = vmul.f32 0.1, %v733_v54  ;;  %v851_v10 = vmul.f32 0.1, %v831_v55  ;;  %v957_v32 = vpack.c.bf16 %v949_v53, %v949_v53 }
 0x19d   :  { %v737_v26 = vrot.slane %v736_v17, 2  ;;  %v835_v9 = vrot.slane %v834_v18, 2  ;;  %v933_v27 = vrot.slane %v932_v19, 2  ;;  %v956_v24 = vpack.c.bf16 %v948_v7, %v948_v7 }
 0x19e   :  { %v788_v56 = vsel %vm764_vm5, %v663_v44, 0.0  ;;  %v886_v46 = vsel %vm862_vm6, %v663_v44, 0.0  ;;  %v1046_v31 = vperm.slane %v957_v32, 0 }
 0x19f   :  { %v610_v35 = vpop.f32.mrf.mxu3  ;;  %v738_v36 = vadd.f32 %v737_v26, %v736_v17  ;;  %v836_v37 = vadd.f32 %v835_v9, %v834_v18  ;;  %v934_v38 = vadd.f32 %v933_v27, %v932_v19  ;;  %v858_v19 = vpack.c.bf16 %v850_v3, %v850_v3 }
 0x1a0   :  { %v628_v25 = vadd.f32 %v610_v35, %v473_v30  ;;  %v761_v26 = vpack.c.bf16 %v753_v8, %v753_v8  ;;  %v972_v9 = vperm.slane %v760_v6, 0  ;;  %v859_v27 = vpack.c.bf16 %v851_v10, %v851_v10 }
 0x1a1   :  { %v739_v29 = vrot.slane %v738_v36, 1  ;;  %v837_v40 = vrot.slane %v836_v37, 1  ;;  %v935_v2 = vrot.slane %v934_v38, 1 }
 0x1a2   :  { %v648_v45 = vadd.f32 %v1885_v49, %v628_v25  ;;  %v973_v41 = vperm.slane %v761_v26, 0  ;;  %v980_v42 = vunpack.c.l.b16 %v972_v9  ;;  %v1013_v43 = vperm.slane %v859_v27, 0 }
 0x1a3   :  { %v740_v63 = vadd.f32 %v739_v29, %v738_v36  ;;  %v838_v0 = vadd.f32 %v837_v40, %v836_v37  ;;  %v936_v1 = vadd.f32 %v935_v2, %v934_v38  ;;  %v1012_v38 = vperm.slane %v858_v19, 0 }
 0x1a4   :  { %v664_v22 = vmax.f32 %v648_v45, 0.0 }
 0x1a5   :  { %v754_v15 = vmul.f32 0.1, %v740_v63  ;;  %v852_v17 = vmul.f32 0.1, %v838_v0  ;;  %v950_v18 = vmul.f32 0.1, %v936_v1  ;;  %v1020_v54 = vunpack.c.l.b16 %v1012_v38 }
 0x1a6   :  { %v691_v57 = vsel %vm669_vm7, %v664_v22, 0.0  ;;  %v789_v49 = vsel %vm767_vm8, %v664_v22, 0.0  ;;  %v887_v58 = vsel %vm865_vm9, %v664_v22, 0.0 }
 0x1a7   :  { %v741_v60 = vadd.f32 %v691_v57, %v663_v44  ;;  %v839_v61 = vadd.f32 %v789_v49, %v788_v56  ;;  %v937_v62 = vadd.f32 %v887_v58, %v886_v46  ;;  %v762_v16 = vpack.c.bf16 %v754_v15, %v754_v15 }
 0x1a8   :  { %v860_v33 = vpack.c.bf16 %v852_v17, %v852_v17  ;;  %v958_v35 = vpack.c.bf16 %v950_v18, %v950_v18  ;;  %v1045_v44 = vperm.slane %v956_v24, 0  ;;  %v981_v56 = vunpack.c.l.b16 %v973_v41 }
 0x1a9   :  { %v742_v4 = vrot.slane %v741_v60, 4  ;;  %v840_v34 = vrot.slane %v839_v61, 4  ;;  %v938_v5 = vrot.slane %v937_v62, 4  ;;  %v974_v29 = vperm.slane %v762_v16, 0 }
 0x1aa   :  { %v1014_v40 = vperm.slane %v860_v33, 0  ;;  %v1047_v2 = vperm.slane %v958_v35, 0  ;;  %v991_v46 = vsel %vm990_vm13, %v980_v42, %v1965_v39  ;;  %v1021_v57 = vunpack.c.l.b16 %v1013_v43 }
 0x1ab   :  { %v743_v11 = vadd.f32 %v742_v4, %v741_v60  ;;  %v841_v13 = vadd.f32 %v840_v34, %v839_v61  ;;  %v939_v14 = vadd.f32 %v938_v5, %v937_v62  ;;  %v1053_v49 = vunpack.c.l.b16 %v1045_v44 }
 0x1ac   :  { %v1054_v61 = vunpack.c.l.b16 %v1046_v31  ;;  %v982_v62 = vunpack.c.l.b16 %v974_v29  ;;  %v1022_v63 = vunpack.c.l.b16 %v1014_v40  ;;  %v1055_v0 = vunpack.c.l.b16 %v1047_v2 }
 0x1ad   :  { %v744_v20 = vrot.slane %v743_v11, 2  ;;  %v842_v21 = vrot.slane %v841_v13, 2  ;;  %v940_v23 = vrot.slane %v939_v14, 2  ;;  %v1027_v4 = vsel %vm990_vm13, %v1020_v54, %v1967_v50 }
 0x1ae   :  { %v993_v5 = vsel %vm992_vm14, %v981_v56, %v991_v46  ;;  %v1028_v39 = vsel %vm992_vm14, %v1021_v57, %v1027_v4  ;;  %v1060_v6 = vsel %vm990_vm13, %v1053_v49, %v1970_v52  ;;  %v1582_v52 = vld [vmem:[%s2042_s6] ss:$0 sm:$0xff] }
 0x1af   :  { %v745_v28 = vadd.f32 %v744_v20, %v743_v11  ;;  %v843_v12 = vadd.f32 %v842_v21, %v841_v13  ;;  %v941_v30 = vadd.f32 %v940_v23, %v939_v14  ;;  %v1061_v11 = vsel %vm992_vm14, %v1054_v61, %v1060_v6 }
 0x1b0   :  { %v995_v13 = vsel %vm994_vm15, %v982_v62, %v993_v5  ;;  %v1029_v14 = vsel %vm994_vm15, %v1022_v63, %v1028_v39  ;;  %v1062_v50 = vsel %vm994_vm15, %v1055_v0, %v1061_v11 }
 0x1b1   :  { %v746_v36 = vrot.slane %v745_v28, 1  ;;  %v844_v37 = vrot.slane %v843_v12, 1  ;;  %v942_v25 = vrot.slane %v941_v30, 1 }
 0x1b3   :  { %v747_v45 = vadd.f32 %v746_v36, %v745_v28  ;;  %v845_v47 = vadd.f32 %v844_v37, %v843_v12  ;;  %v943_v48 = vadd.f32 %v942_v25, %v941_v30 }
 0x1b5   :  { %v755_v22 = vmul.f32 0.1, %v747_v45  ;;  %v853_v51 = vmul.f32 0.1, %v845_v47  ;;  %v951_v55 = vmul.f32 0.1, %v943_v48 }
 0x1b7   :  { %v763_v58 = vpack.c.bf16 %v755_v22, %v755_v22  ;;  %v861_v59 = vpack.c.bf16 %v853_v51, %v853_v51  ;;  %v959_v60 = vpack.c.bf16 %v951_v55, %v951_v55 }
 0x1b9   :  { %v975_v1 = vperm.slane %v763_v58, 0  ;;  %v1015_v3 = vperm.slane %v861_v59, 0  ;;  %v1048_v34 = vperm.slane %v959_v60, 0 }
 0x1bb   :  { %v983_v7 = vunpack.c.l.b16 %v975_v1  ;;  %v1023_v8 = vunpack.c.l.b16 %v1015_v3  ;;  %v1056_v10 = vunpack.c.l.b16 %v1048_v34 }
 0x1bd   :  { %v997_v53 = vsel %vm996_vm0, %v983_v7, %v995_v13  ;;  %v1030_v15 = vsel %vm996_vm0, %v1023_v8, %v1029_v14  ;;  %v1063_v17 = vsel %vm996_vm0, %v1056_v10, %v1062_v50 }
 0x1be   :  { %v998_v18 = vpack.c.b16 %v997_v53, %v997_v53  ;;  %v1031_v19 = vpack.c.b16 %v1030_v15, %v1030_v15  ;;  %v1064_v20 = vpack.c.b16 %v1063_v17, %v1063_v17 }
 0x1c0   :  { %1270 = vmatmul.bf16.vlgmr.msrb.gmra.mxu0 %v998_v18  ;;  %1283 = vmatmul.bf16.vlgmr.msrb.gmra.mxu1 %v1031_v19 }
 0x1c1   :  { %1296 = vmatmul.bf16.vlgmr.msrb.gmra.mxu2 %v1064_v20 }
 0x23d   :  { %v1271_v21 = vpop.f32.mrf.mxu0  ;;  %v1284_v23 = vpop.f32.mrf.mxu1 }
 0x23e   :  { %v1272_v24 = vadd.f32 %v1582_v52, %v1271_v21 }
 0x240   :  { %v1285_v26 = vadd.f32 %v1284_v23, %v1272_v24 }
 0x244   :  { %v1297_v9 = vpop.f32.mrf.mxu2 }
 0x245   :  { %v1298_v27 = vadd.f32 %v1297_v9, %v1285_v26  ;;  %v1273_v28 = vpop.f32.mrf.mxu0  ;;  %v1286_v12 = vpop.f32.mrf.mxu1 }
 0x247   :  { %1301 = vst [vmem:[#allocation5] sm:$0xff] %v1298_v27 }
 0x248   :  { %1312 = dma.vmem_to_hbm [thread:$0]  %s1308_s28, 128, %s1310_s8, [#allocation4]  }
 0x24c   :  { %v1299_v30 = vpop.f32.mrf.mxu2 }
 0x24d   :  { %1633 = dma.done.wait [#allocation4], 128  }
 0x24e   :  { %1634 = vsyncadd [#allocation4], 4294967168 }
 0x24f   :  { %1317 = vsyncpa [#allocation3], 1 }
 0x250   :  { %1318 = vsyncpa [#allocation4], 1 }

</bundles_post_ra>
